<compile_context>
chip_gen: v5e
topology: v5e:2x2
jax: 0.10.0
libtpu: 0.0.40
codegen_flags: <defaults>
</compile_context>

<pallas_src>
import math

import jax
import jax.numpy as jnp
from jax.experimental import pallas as pl
from jax.experimental.pallas import tpu as pltpu

_LANE = 128
_SUBLANE = 8


# ---------------------------------------------------------------------------
# Buffer setup (plain JAX) — matches the PyTorch __init__.
# ---------------------------------------------------------------------------
def make_positional_encoding_table(dim_model: int, max_len: int = 5000) -> jnp.ndarray:
    position = jnp.arange(0, max_len, dtype=jnp.float32)[:, None]              # (max_len, 1)
    div_term = jnp.exp(
        jnp.arange(0, dim_model, 2, dtype=jnp.float32) * (-math.log(10000.0) / dim_model)
    )                                                                           # (ceil(D/2),)
    pe = jnp.zeros((max_len, dim_model), dtype=jnp.float32)
    pe = pe.at[:, 0::2].set(jnp.sin(position * div_term))
    # Guard odd dim_model: cos fills floor(D/2) columns (identical to PyTorch for even D).
    pe = pe.at[:, 1::2].set(jnp.cos(position * div_term[: dim_model // 2]))
    return pe                                                                   # (max_len, D)


# ---------------------------------------------------------------------------
# Pallas kernel: broadcast tile add; accumulate in f32, single cast to output.
# ---------------------------------------------------------------------------
def _pe_add_kernel(x_ref, pe_ref, o_ref):
    # x_ref / o_ref: (TB, TS, D2) tiles; pe_ref: (TS, D2) f32 table tile.
    x = x_ref[...].astype(jnp.float32)
    pe = pe_ref[...].astype(jnp.float32)
    o_ref[...] = (x + pe[None, :, :]).astype(o_ref.dtype)


def _choose_tiles(batch: int, s_rows: int, lane_dim: int, itemsize: int,
                  target_bytes: int = 2 << 20):
    """Pick (TB, TS): ~target_bytes tiles, dtype-aware sublane-aligned seq tile."""
    sublane = max(_SUBLANE, 32 // itemsize)        # f32: 8, bf16: 16, int8/fp8: 32
    row_bytes = max(1, lane_dim * itemsize)
    rows = max(1, target_bytes // row_bytes)
    ts = max(sublane, (rows // sublane) * sublane)
    s_pad = -(-s_rows // sublane) * sublane        # round S up to a sublane multiple
    ts = min(ts, s_pad)
    if ts >= s_pad:
        # Whole sequence fits in one tile: also block the batch axis so each
        # grid step still moves a reasonably large DMA (avoid tiny-tile regime).
        per_batch = max(1, s_pad * row_bytes)
        tb = int(max(1, min(batch, target_bytes // per_batch)))
    else:
        tb = 1
    return tb, ts


def positional_encoding_forward(x: jnp.ndarray, pe_table: jnp.ndarray) -> jnp.ndarray:
    """x: (B, S, D); pe_table: (max_len, D) float32. Returns x + pe_table[:S] over batch."""
    B, S, D = x.shape
    max_len = pe_table.shape[0]

    # Lane-dense repack: fold consecutive sequence rows so the lane dim is a
    # multiple of 128. Row-major reshapes of BOTH x and the *full* pe table are
    # layout-preserving (no slice, no copy, no extra HBM pass).
    S2, D2 = S, D
    x2, pe2 = x, pe_table
    if D % _LANE != 0:
        fold = _LANE // math.gcd(D, _LANE)
        if fold > 1 and S % fold == 0 and max_len % fold == 0:
            S2, D2 = S // fold, D * fold
            x2 = x.reshape(B, S2, D2)
            pe2 = pe_table.reshape(max_len // fold, D2)

    itemsize = jnp.dtype(x.dtype).itemsize
    TB, TS = _choose_tiles(B, S2, D2, itemsize)
    # Batch innermost: pe block index is constant across batch revisits -> DMA elided.
    grid = (pl.cdiv(S2, TS), pl.cdiv(B, TB))

    cost = pl.CostEstimate(
        flops=B * S * D,
        transcendentals=0,
        bytes_accessed=2 * B * S * D * itemsize + S * D * jnp.dtype(pe_table.dtype).itemsize,
    )

    out = pl.pallas_call(
        _pe_add_kernel,
        out_shape=jax.ShapeDtypeStruct((B, S2, D2), x.dtype),
        grid_spec=pltpu.PrefetchScalarGridSpec(
            num_scalar_prefetch=0,
            grid=grid,
            in_specs=[
                pl.BlockSpec((TB, TS, D2), lambda s, b: (b, s, 0)),   # x
                pl.BlockSpec((TS, D2), lambda s, b: (s, 0)),          # pe (first tiles only)
            ],
            out_specs=pl.BlockSpec((TB, TS, D2), lambda s, b: (b, s, 0)),
        ),
        compiler_params=pltpu.CompilerParams(
            dimension_semantics=("parallel", "arbitrary"),
            vmem_limit_bytes=32 << 20,
        ),
        cost_estimate=cost,
    )(x2, pe2)

    return out.reshape(B, S, D)


if __name__ == "__main__":
    # Small shapes consistent with the module's forward: (batch, seq, dim_model)
    B, S, D = 2, 8, 32
    MAX_LEN = 64

    key = jax.random.PRNGKey(0)
    x = jax.random.normal(key, (B, S, D), dtype=jnp.float32)

    pe_table = make_positional_encoding_table(D, max_len=MAX_LEN)

    out = positional_encoding_forward(x, pe_table)
    out = jax.block_until_ready(out)

    # Pure-JAX reference (mirrors the PyTorch forward).
    ref = x + pe_table[None, :S, :]
    assert out.shape == (B, S, D)
    assert out.dtype == x.dtype
    assert jnp.allclose(out, ref, atol=1e-6, rtol=1e-6)

    print("KERNEL_OK")
</pallas_src>

<mosaic_0001>
module attributes {stable_mosaic.version = 11 : i64} {
  func.func @_pe_add_kernel(%arg0: i32, %arg1: i32, %arg2: memref<2x8x128xf32, #tpu.memory_space<vmem>>, %arg3: memref<8x128xf32, #tpu.memory_space<vmem>>, %arg4: memref<2x8x128xf32, #tpu.memory_space<vmem>>) attributes {dimension_semantics = [#tpu.dimension_semantics<parallel>, #tpu.dimension_semantics<arbitrary>], iteration_bounds = array<i64: 1, 1>, scalar_prefetch = 0 : i64, scratch_operands = 0 : i64, tpu.core_type = #tpu.core_type<tc>, window_params = [{transform_indices = @transform_0, window_bounds = array<i64: 2, 8, 128>}, {transform_indices = @transform_1, window_bounds = array<i64: 8, 128>}, {transform_indices = @transform_2, window_bounds = array<i64: 2, 8, 128>}]} {
    %c0 = arith.constant 0 : index
    %c0_0 = arith.constant 0 : index
    %c0_1 = arith.constant 0 : index
    %0 = vector.load %arg2[%c0, %c0_0, %c0_1] : memref<2x8x128xf32, #tpu.memory_space<vmem>>, vector<2x8x128xf32>
    %c0_2 = arith.constant 0 : index
    %c0_3 = arith.constant 0 : index
    %1 = vector.load %arg3[%c0_2, %c0_3] : memref<8x128xf32, #tpu.memory_space<vmem>>, vector<8x128xf32>
    %2 = vector.shape_cast %1 : vector<8x128xf32> to vector<1x8x128xf32>
    %3 = vector.broadcast %2 : vector<1x8x128xf32> to vector<2x8x128xf32>
    %4 = arith.addf %0, %3 : vector<2x8x128xf32>
    %c0_4 = arith.constant 0 : index
    %c0_5 = arith.constant 0 : index
    %c0_6 = arith.constant 0 : index
    %5 = vector.load %arg4[%c0_4, %c0_5, %c0_6] : memref<2x8x128xf32, #tpu.memory_space<vmem>>, vector<2x8x128xf32>
    tpu.vector_store %arg4[%c0_4, %c0_5, %c0_6], %4 {strides = array<i32>} : memref<2x8x128xf32, #tpu.memory_space<vmem>>, vector<2x8x128xf32>,
    return
  }
  func.func @transform_0(%arg0: i32, %arg1: i32) -> (i32, i32, i32) {
    %c0_i32 = arith.constant 0 : i32
    %c0_i32_0 = arith.constant 0 : i32
    return %arg1, %arg0, %c0_i32 : i32, i32, i32
  }
  func.func @transform_1(%arg0: i32, %arg1: i32) -> (i32, i32) {
    %c0_i32 = arith.constant 0 : i32
    %c0_i32_0 = arith.constant 0 : i32
    return %arg0, %c0_i32 : i32, i32
  }
  func.func @transform_2(%arg0: i32, %arg1: i32) -> (i32, i32, i32) {
    %c0_i32 = arith.constant 0 : i32
    %c0_i32_0 = arith.constant 0 : i32
    return %arg1, %arg0, %c0_i32 : i32, i32, i32
  }
}

</mosaic_0001>

<bundles_post_ra>
// kernel: tpu_custom_call.1
= control target key start
LH: loop header
LB: loop body
LE: loop exit
PB: predicated region body
PF: predicated region fallthrough
CT: control target
= control target key end

     0   :  { %7 = vsyncpa [#allocation3], 0  ;;  %s205_s0 = inlined_call_operand.hbm [shape: f32[2,2,128], index: 0, kind: input, shape index: {}]   ;;  %s206_s1 = inlined_call_operand.hbm [shape: f32[16,128], index: 1, kind: input, shape index: {}]   ;;  %s207_s2 = inlined_call_operand.hbm [shape: f32[2,2,128], index: 2, kind: output, shape index: {}]  }
   0x1   :  { %8 = vsyncpa [#allocation6], 0 }
   0x2   :  { %9 = vsyncpa [#allocation4], 0 }
   0x3   :  { %13 = vsyncadd [#allocation3], 192  ;;  %s18_s9 = sld [smem:[#allocation0]]   ;;  %s26_s12 = sshll.u32 %s205_s0, 4  ;;  %s27_s12 = int_to_ptr.hbm [resolvable:$true] %s26_s12 }
   0x4   :  { %s165_s13 = smov [#allocation2]   ;;  %s166_s15 = smov 32  }
   0x5   :  { %s28_s14 = sshll.u32 %s165_s13, 4  ;;  %35 = sst [smem:[#allocation9]] %s166_s15  ;;  %s29_s14 = int_to_ptr.vmem [resolvable:$true] %s28_s14 }
   0x6   :  { %s167_s16 = smov 128   ;;  %s168_s18 = smov 1  }
   0x7   :  { %37 = sst [smem:[#allocation9 + $0x1]] %s167_s16  ;;  %s169_s20 = smov 2  }
   0x8   :  { %39 = sst [smem:[#allocation9 + $0x2]] %s168_s18  ;;  %s170_s21 = smov [#allocation3]  }
   0x9   :  { %s117_s17 = sshll.u32 %s18_s9, 26  ;;  %41 = sst [smem:[#allocation9 + $0x3]] %s166_s15 }
   0xa   :  { %s118_s19 = sadd.s32 134217728, %s117_s17  ;;  %43 = sst [smem:[#allocation9 + $0x4]] %s166_s15 }
   0xb   :  { %45 = sst [smem:[#allocation9 + $0x5]] %s169_s20  ;;  %s171_s22 = smov [#allocation8]  }
   0xc   :  { %47 = dma.general %s27_s12, 64, %s29_s14, %s170_s21, %s171_s22, [#allocation9], %s118_s19, 0  }
   0xd   :  { %s53_s24 = sshll.u32 %s206_s1, 4  ;;  %s172_s25 = smov [#allocation5]   ;;  %s54_s24 = int_to_ptr.hbm [resolvable:$true] %s53_s24 }
   0xe   :  { %s55_s26 = sshll.u32 %s172_s25, 4  ;;  %s56_s26 = int_to_ptr.vmem [resolvable:$true] %s55_s26 }
   0xf   :  { %58 = dma.hbm_to_vmem [thread:$0]  %s54_s24, 128, %s56_s26, [#allocation6]  }
  0x10   :  { %159 = dma.done.wait [#allocation3], 256  }
  0x11   :  { %160 = vsyncadd [#allocation3], 4294967040 }
  0x12   :  { %161 = dma.done.wait [#allocation6], 128  }
  0x13   :  { %162 = vsyncadd [#allocation6], 4294967168  ;;  %v67_v0 = vld [vmem:[#allocation2] sm:$0xff]  ;;  %v69_v1 = vld [vmem:[#allocation5] sm:$0xff] }
  0x14   :  { %v68_v2 = vld [vmem:[#allocation2 + $0x8] sm:$0xff]  ;;  %v70_v3 = vadd.f32 %v69_v1, %v67_v0 }
  0x15   :  { %v71_v4 = vadd.f32 %v69_v1, %v68_v2 }
  0x16   :  { %72 = vst [vmem:[#allocation7] sm:$0xff] %v70_v3 }
  0x17   :  { %73 = vst [vmem:[#allocation7 + $0x8] sm:$0xff] %v71_v4 }
  0x18   :  { %77 = vsyncadd [#allocation4], 192  ;;  %s90_s1 = sshll.u32 %s207_s2, 4  ;;  %s173_s29 = smov [#allocation7]   ;;  %s91_s1 = int_to_ptr.hbm [resolvable:$true] %s90_s1 }
  0x19   :  { %s88_s30 = sshll.u32 %s173_s29, 4  ;;  %s174_s3 = smov 128   ;;  %s89_s30 = int_to_ptr.vmem [resolvable:$true] %s88_s30 }
  0x1a   :  { %97 = sst [smem:[#allocation11]] %s174_s3  ;;  %s175_s4 = smov 32  }
  0x1b   :  { %99 = sst [smem:[#allocation11 + $0x1]] %s175_s4  ;;  %s176_s5 = smov 1  }
  0x1c   :  { %101 = sst [smem:[#allocation11 + $0x2]] %s176_s5  ;;  %s177_s6 = smov 2  }
  0x1d   :  { %103 = sst [smem:[#allocation11 + $0x3]] %s175_s4  ;;  %s178_s7 = smov [#allocation4]  }
  0x1e   :  { %105 = sst [smem:[#allocation11 + $0x4]] %s175_s4  ;;  %s179_s8 = smov [#allocation10]  }
  0x1f   :  { %107 = sst [smem:[#allocation11 + $0x5]] %s177_s6  ;;  %s180_s9 = smov 0  }
  0x20   :  { %109 = dma.general %s89_s30, 64, %s91_s1, %s178_s7, %s179_s8, [#allocation11], %s180_s9, 0  }
  0x21   :  { %163 = dma.done.wait [#allocation4], 256  }
  0x22   :  { %164 = vsyncadd [#allocation4], 4294967040 }
  0x23   :  { %114 = vsyncpa [#allocation3], 1 }
  0x24   :  { %115 = vsyncpa [#allocation6], 1 }
  0x25   :  { %116 = vsyncpa [#allocation4], 1 }

</bundles_post_ra>
